<compile_context>
chip_gen: v5e
topology: v5e:2x2
jax: 0.10.0
libtpu: 0.0.40
codegen_flags: <defaults>
</compile_context>

<pallas_src>
import functools

import jax
import jax.numpy as jnp
from jax.experimental import pallas as pl
from jax.experimental.pallas import tpu as pltpu

BN_EPS = 1e-5


def _round_up(n, m):
    return ((n + m - 1) // m) * m


def face_mlp_kernel(x_ref, w1_ref, b1_ref, w2_ref, b2_ref, w3_ref, b3_ref, o_ref):
    """Fused 3-layer MLP on one (TB, D) batch tile (BN already folded into w/b)."""
    # Cast the f32 x tile to the MXU compute dtype on the VPU (free under MXU
    # slack); accumulation stays f32 via preferred_element_type.
    x = x_ref[...].astype(w1_ref.dtype)

    # ---- Linear 1 + ReLU ----
    h = jnp.dot(x, w1_ref[...], preferred_element_type=jnp.float32) + b1_ref[...]
    h = jnp.maximum(h, 0.0)

    # ---- Linear 2 (+ folded BN1) + ReLU ----
    h = jnp.dot(h.astype(w2_ref.dtype), w2_ref[...],
                preferred_element_type=jnp.float32) + b2_ref[...]
    h = jnp.maximum(h, 0.0)

    # ---- Linear 3 (+ folded BN2), lane-dense padded output, bf16 writeback ----
    out = jnp.dot(h.astype(w3_ref.dtype), w3_ref[...],
                  preferred_element_type=jnp.float32) + b3_ref[...]
    o_ref[...] = out.astype(o_ref.dtype)


def face_mlp(x, params, *, block_batch=None, compute_dtype=jnp.bfloat16,
             core_parallel=False):
    """Fused FaceMLP forward pass. x: (B, input_dim) float32. Returns f32 logits."""
    (w1, b1, g1, be1, m1, v1,
     w2, b2, g2, be2, m2, v2,
     w3, b3) = params

    B, D = x.shape
    H = w1.shape[1]
    num_classes = w3.shape[1]

    # ---- Fold eval-mode BatchNorms into the adjacent Linear layers ----
    # After ReLU:  y = h * scale + shift ;  then y @ W + b
    #   == h @ (scale[:,None] * W) + (b + shift @ W)
    scale1 = g1 / jnp.sqrt(v1 + BN_EPS)            # (1, H)
    shift1 = be1 - m1 * scale1                     # (1, H)
    w2f = w2 * scale1.reshape(H, 1)                # (H, H)
    b2f = b2 + shift1 @ w2                         # (1, H)

    scale2 = g2 / jnp.sqrt(v2 + BN_EPS)
    shift2 = be2 - m2 * scale2
    w3f = w3 * scale2.reshape(H, 1)                # (H, C)
    b3f = b3 + shift2 @ w3                         # (1, C)

    # ---- Lane-dense output: pad classifier to a multiple of 128 lanes ----
    NP = _round_up(max(num_classes, 128), 128)
    w3p = jnp.zeros((H, NP), jnp.float32).at[:, :num_classes].set(w3f)
    b3p = jnp.zeros((1, NP), jnp.float32).at[:, :num_classes].set(b3f)

    # ---- Batch tiling: large tiles to amortize per-step grid overhead ----
    wbytes = jnp.dtype(compute_dtype).itemsize
    out_bytes = jnp.dtype(jnp.bfloat16).itemsize

    def _vmem_needed(tb):
        # double-buffered x / out tiles + (conservatively 2x) resident weights
        return (2 * (tb * D * 4 + tb * NP * out_bytes)
                + 2 * ((D * H + H * H + H * NP) * wbytes + (2 * H + NP) * 4))

    if block_batch is None:
        block_batch = min(B, 2048)      # small B -> single grid step
    TB = max(16, _round_up(block_batch, 16))   # 16: bf16 sublane packing
    vmem_budget = 48 << 20                      # headroom below v7x's 64 MiB
    while TB > 16 and _vmem_needed(TB) > vmem_budget:
        TB = max(16, _round_up(TB // 2, 16))

    Bp = _round_up(B, TB)
    if Bp != B:
        x = jnp.pad(x, ((0, Bp - B), (0, 0)))
    grid = (Bp // TB,)

    # ---- weights to bf16 (f32 accumulation in-kernel); biases stay f32 ----
    w1_c = w1.astype(compute_dtype)
    w2_c = w2f.astype(compute_dtype)
    w3_c = w3p.astype(compute_dtype)
    b1_c = b1.astype(jnp.float32)
    b2_c = b2f.astype(jnp.float32)
    b3_c = b3p.astype(jnp.float32)

    flops = 2 * Bp * (D * H + H * H + H * NP)
    bytes_accessed = (Bp * D * 4                                   # x (f32)
                      + (D * H + H * H + H * NP) * wbytes          # weights
                      + (2 * H + NP) * 4                           # biases
                      + Bp * NP * out_bytes)                       # out (bf16)

    vmem_limit = min(max(_vmem_needed(TB) + (4 << 20), 32 << 20), 64 << 20)

    # On v7x, core_parallel=True splits the batch grid across the two
    # TensorCores; plain "parallel" is kept as the safe default elsewhere.
    batch_sem = pltpu.CORE_PARALLEL if core_parallel else "parallel"

    out = pl.pallas_call(
        face_mlp_kernel,
        out_shape=jax.ShapeDtypeStruct((Bp, NP), jnp.bfloat16),
        grid_spec=pltpu.PrefetchScalarGridSpec(
            num_scalar_prefetch=0,
            grid=grid,
            in_specs=[
                pl.BlockSpec((TB, D), lambda i: (i, 0)),   # x tile (pipelined, f32)
                pl.BlockSpec((D, H), lambda i: (0, 0)),    # w1  (resident)
                pl.BlockSpec((1, H), lambda i: (0, 0)),    # b1
                pl.BlockSpec((H, H), lambda i: (0, 0)),    # w2 (BN1 folded)
                pl.BlockSpec((1, H), lambda i: (0, 0)),    # b2
                pl.BlockSpec((H, NP), lambda i: (0, 0)),   # w3 (BN2 folded, padded)
                pl.BlockSpec((1, NP), lambda i: (0, 0)),   # b3
            ],
            out_specs=pl.BlockSpec((TB, NP), lambda i: (i, 0)),
        ),
        compiler_params=pltpu.CompilerParams(
            dimension_semantics=(batch_sem,),
            vmem_limit_bytes=vmem_limit,
        ),
        cost_estimate=pl.CostEstimate(
            flops=flops, transcendentals=0, bytes_accessed=bytes_accessed),
    )(x, w1_c, b1_c, w2_c, b2_c, w3_c, b3_c)

    # Slice off batch padding and lane padding; return f32 logits (module dtype).
    return out[:B, :num_classes].astype(jnp.float32)


def init_params(key, input_dim, hidden_dim, num_classes):
    """Deterministic synthetic parameters (shapes match FaceMLP.__init__)."""
    k1, k2, k3, k4, k5 = jax.random.split(key, 5)

    # Linear weights stored as (in, out) = transposed PyTorch layout.
    w1 = jax.random.normal(k1, (input_dim, hidden_dim), jnp.float32) * 0.05
    b1 = jax.random.normal(k2, (1, hidden_dim), jnp.float32) * 0.01
    w2 = jax.random.normal(k3, (hidden_dim, hidden_dim), jnp.float32) * 0.05
    b2 = jax.random.normal(k4, (1, hidden_dim), jnp.float32) * 0.01
    w3 = jax.random.normal(k5, (hidden_dim, num_classes), jnp.float32) * 0.05
    b3 = jnp.zeros((1, num_classes), jnp.float32)

    # BatchNorm1d parameters / running stats (perturbed so BN math is exercised).
    g1 = jnp.ones((1, hidden_dim), jnp.float32) * 1.1
    be1 = jnp.full((1, hidden_dim), 0.05, jnp.float32)
    m1 = jnp.full((1, hidden_dim), 0.02, jnp.float32)
    v1 = jnp.ones((1, hidden_dim), jnp.float32) * 0.9

    g2 = jnp.ones((1, hidden_dim), jnp.float32) * 0.95
    be2 = jnp.full((1, hidden_dim), -0.03, jnp.float32)
    m2 = jnp.full((1, hidden_dim), -0.01, jnp.float32)
    v2 = jnp.ones((1, hidden_dim), jnp.float32) * 1.2

    return (w1, b1, g1, be1, m1, v1,
            w2, b2, g2, be2, m2, v2,
            w3, b3)


def face_mlp_ref(x, params):
    """Pure-JAX f32 reference with the original (unfolded) module semantics."""
    (w1, b1, g1, be1, m1, v1,
     w2, b2, g2, be2, m2, v2,
     w3, b3) = params
    h = jnp.maximum(x @ w1 + b1, 0.0)
    h = (h - m1) * (g1 / jnp.sqrt(v1 + BN_EPS)) + be1
    h = jnp.maximum(h @ w2 + b2, 0.0)
    h = (h - m2) * (g2 / jnp.sqrt(v2 + BN_EPS)) + be2
    return h @ w3 + b3


if __name__ == "__main__":
    batch = 256
    input_dim = 64
    hidden_dim = 128
    num_classes = 2

    key = jax.random.PRNGKey(0)
    kx, kp = jax.random.split(key)
    x = jax.random.normal(kx, (batch, input_dim), jnp.float32)
    params = init_params(kp, input_dim, hidden_dim, num_classes)

    ref = face_mlp_ref(x, params)

    # Default tiling: single grid step (TB = B), resident weights.
    out = jax.block_until_ready(face_mlp(x, params))
    assert out.shape == (batch, num_classes)
    assert out.dtype == jnp.float32
    # bf16 matmul inputs / bf16 output writeback vs. pure-f32 reference.
    assert jnp.allclose(out, ref, atol=3e-2, rtol=3e-2), float(
        jnp.max(jnp.abs(out - ref)))

    # Multi-step batch grid (4 tiles) to exercise the pipelined path.
    run_tiled = functools.partial(face_mlp, block_batch=64)
    out2 = jax.block_until_ready(run_tiled(x, params))
    assert jnp.allclose(out2, ref, atol=3e-2, rtol=3e-2), float(
        jnp.max(jnp.abs(out2 - ref)))

    print("KERNEL_OK")
</pallas_src>

<mosaic_0001>
module attributes {stable_mosaic.version = 11 : i64} {
  func.func @face_mlp_kernel(%arg0: i32, %arg1: memref<256x64xf32, #tpu.memory_space<vmem>>, %arg2: memref<64x128xbf16, #tpu.memory_space<vmem>>, %arg3: memref<1x128xf32, #tpu.memory_space<vmem>>, %arg4: memref<128x128xbf16, #tpu.memory_space<vmem>>, %arg5: memref<1x128xf32, #tpu.memory_space<vmem>>, %arg6: memref<128x128xbf16, #tpu.memory_space<vmem>>, %arg7: memref<1x128xf32, #tpu.memory_space<vmem>>, %arg8: memref<256x128xbf16, #tpu.memory_space<vmem>>) attributes {dimension_semantics = [#tpu.dimension_semantics<parallel>], iteration_bounds = array<i64: 1>, scalar_prefetch = 0 : i64, scratch_operands = 0 : i64, tpu.core_type = #tpu.core_type<tc>, window_params = [{transform_indices = @transform_0, window_bounds = array<i64: 256, 64>}, {pipeline_mode = #tpu.pipeline_mode<synchronous>, transform_indices = @transform_1, window_bounds = array<i64: 64, 128>}, {pipeline_mode = #tpu.pipeline_mode<synchronous>, transform_indices = @transform_2, window_bounds = array<i64: 1, 128>}, {pipeline_mode = #tpu.pipeline_mode<synchronous>, transform_indices = @transform_3, window_bounds = array<i64: 128, 128>}, {pipeline_mode = #tpu.pipeline_mode<synchronous>, transform_indices = @transform_4, window_bounds = array<i64: 1, 128>}, {pipeline_mode = #tpu.pipeline_mode<synchronous>, transform_indices = @transform_5, window_bounds = array<i64: 128, 128>}, {pipeline_mode = #tpu.pipeline_mode<synchronous>, transform_indices = @transform_6, window_bounds = array<i64: 1, 128>}, {transform_indices = @transform_7, window_bounds = array<i64: 256, 128>}]} {
    %c0 = arith.constant 0 : index
    %c0_0 = arith.constant 0 : index
    %0 = vector.load %arg1[%c0, %c0_0] : memref<256x64xf32, #tpu.memory_space<vmem>>, vector<256x64xf32>
    %1 = arith.truncf %0 : vector<256x64xf32> to vector<256x64xbf16>
    %c0_1 = arith.constant 0 : index
    %c0_2 = arith.constant 0 : index
    %2 = vector.load %arg2[%c0_1, %c0_2] : memref<64x128xbf16, #tpu.memory_space<vmem>>, vector<64x128xbf16>
    %cst = arith.constant dense<0.000000e+00> : vector<256x128xf32>
    %3 = tpu.matmul %1, %2, %cst {dimension_numbers = #tpu.dot_dimension_numbers<[1], [0], [0], [1], [0, 0, 1, 1], [], []>} : vector<256x64xbf16>, vector<64x128xbf16>, vector<256x128xf32> -> vector<256x128xf32>
    %c0_3 = arith.constant 0 : index
    %c0_4 = arith.constant 0 : index
    %4 = vector.load %arg3[%c0_3, %c0_4] : memref<1x128xf32, #tpu.memory_space<vmem>>, vector<1x128xf32>
    %5 = vector.broadcast %4 : vector<1x128xf32> to vector<256x128xf32>
    %6 = arith.addf %3, %5 : vector<256x128xf32>
    %cst_5 = arith.constant 0.000000e+00 : f32
    %7 = vector.broadcast %cst_5 : f32 to vector<256x128xf32>
    %8 = arith.maximumf %6, %7 : vector<256x128xf32>
    %9 = arith.truncf %8 : vector<256x128xf32> to vector<256x128xbf16>
    %c0_6 = arith.constant 0 : index
    %c0_7 = arith.constant 0 : index
    %10 = vector.load %arg4[%c0_6, %c0_7] : memref<128x128xbf16, #tpu.memory_space<vmem>>, vector<128x128xbf16>
    %cst_8 = arith.constant dense<0.000000e+00> : vector<256x128xf32>
    %11 = tpu.matmul %9, %10, %cst_8 {dimension_numbers = #tpu.dot_dimension_numbers<[1], [0], [0], [1], [0, 0, 1, 1], [], []>} : vector<256x128xbf16>, vector<128x128xbf16>, vector<256x128xf32> -> vector<256x128xf32>
    %c0_9 = arith.constant 0 : index
    %c0_10 = arith.constant 0 : index
    %12 = vector.load %arg5[%c0_9, %c0_10] : memref<1x128xf32, #tpu.memory_space<vmem>>, vector<1x128xf32>
    %13 = vector.broadcast %12 : vector<1x128xf32> to vector<256x128xf32>
    %14 = arith.addf %11, %13 : vector<256x128xf32>
    %cst_11 = arith.constant 0.000000e+00 : f32
    %15 = vector.broadcast %cst_11 : f32 to vector<256x128xf32>
    %16 = arith.maximumf %14, %15 : vector<256x128xf32>
    %17 = arith.truncf %16 : vector<256x128xf32> to vector<256x128xbf16>
    %c0_12 = arith.constant 0 : index
    %c0_13 = arith.constant 0 : index
    %18 = vector.load %arg6[%c0_12, %c0_13] : memref<128x128xbf16, #tpu.memory_space<vmem>>, vector<128x128xbf16>
    %cst_14 = arith.constant dense<0.000000e+00> : vector<256x128xf32>
    %19 = tpu.matmul %17, %18, %cst_14 {dimension_numbers = #tpu.dot_dimension_numbers<[1], [0], [0], [1], [0, 0, 1, 1], [], []>} : vector<256x128xbf16>, vector<128x128xbf16>, vector<256x128xf32> -> vector<256x128xf32>
    %c0_15 = arith.constant 0 : index
    %c0_16 = arith.constant 0 : index
    %20 = vector.load %arg7[%c0_15, %c0_16] : memref<1x128xf32, #tpu.memory_space<vmem>>, vector<1x128xf32>
    %21 = vector.broadcast %20 : vector<1x128xf32> to vector<256x128xf32>
    %22 = arith.addf %19, %21 : vector<256x128xf32>
    %23 = arith.truncf %22 : vector<256x128xf32> to vector<256x128xbf16>
    %c0_17 = arith.constant 0 : index
    %c0_18 = arith.constant 0 : index
    %24 = vector.load %arg8[%c0_17, %c0_18] : memref<256x128xbf16, #tpu.memory_space<vmem>>, vector<256x128xbf16>
    tpu.vector_store %arg8[%c0_17, %c0_18], %23 {strides = array<i32>} : memref<256x128xbf16, #tpu.memory_space<vmem>>, vector<256x128xbf16>,
    return
  }
  func.func @transform_0(%arg0: i32) -> (i32, i32) {
    %c0_i32 = arith.constant 0 : i32
    %c0_i32_0 = arith.constant 0 : i32
    return %arg0, %c0_i32 : i32, i32
  }
  func.func @transform_1(%arg0: i32) -> (i32, i32) {
    %c0_i32 = arith.constant 0 : i32
    %c0_i32_0 = arith.constant 0 : i32
    %c0_i32_1 = arith.constant 0 : i32
    return %c0_i32, %c0_i32_0 : i32, i32
  }
  func.func @transform_2(%arg0: i32) -> (i32, i32) {
    %c0_i32 = arith.constant 0 : i32
    %c0_i32_0 = arith.constant 0 : i32
    %c0_i32_1 = arith.constant 0 : i32
    return %c0_i32, %c0_i32_0 : i32, i32
  }
  func.func @transform_3(%arg0: i32) -> (i32, i32) {
    %c0_i32 = arith.constant 0 : i32
    %c0_i32_0 = arith.constant 0 : i32
    %c0_i32_1 = arith.constant 0 : i32
    return %c0_i32, %c0_i32_0 : i32, i32
  }
  func.func @transform_4(%arg0: i32) -> (i32, i32) {
    %c0_i32 = arith.constant 0 : i32
    %c0_i32_0 = arith.constant 0 : i32
    %c0_i32_1 = arith.constant 0 : i32
    return %c0_i32, %c0_i32_0 : i32, i32
  }
  func.func @transform_5(%arg0: i32) -> (i32, i32) {
    %c0_i32 = arith.constant 0 : i32
    %c0_i32_0 = arith.constant 0 : i32
    %c0_i32_1 = arith.constant 0 : i32
    return %c0_i32, %c0_i32_0 : i32, i32
  }
  func.func @transform_6(%arg0: i32) -> (i32, i32) {
    %c0_i32 = arith.constant 0 : i32
    %c0_i32_0 = arith.constant 0 : i32
    %c0_i32_1 = arith.constant 0 : i32
    return %c0_i32, %c0_i32_0 : i32, i32
  }
  func.func @transform_7(%arg0: i32) -> (i32, i32) {
    %c0_i32 = arith.constant 0 : i32
    %c0_i32_0 = arith.constant 0 : i32
    return %arg0, %c0_i32 : i32, i32
  }
}

</mosaic_0001>

<bundles_post_ra>
// kernel: tpu_custom_call.1
= control target key start
LH: loop header
LB: loop body
LE: loop exit
PB: predicated region body
PF: predicated region fallthrough
CT: control target
= control target key end

     0   :  { %s1334_s0 = inlined_call_operand.vmem [shape: f32[256,64], index: 0, kind: input, shape index: {}]   ;;  %s1335_s1 = inlined_call_operand.vmem [shape: bf16[64,128], index: 1, kind: input, shape index: {}]   ;;  %s1336_s2 = inlined_call_operand.vmem [shape: f32[1,128], index: 2, kind: input, shape index: {}]   ;;  %s1337_s3 = inlined_call_operand.vmem [shape: bf16[128,128], index: 3, kind: input, shape index: {}]   ;;  %s1338_s4 = inlined_call_operand.vmem [shape: f32[1,128], index: 4, kind: input, shape index: {}]   ;;  %s1339_s5 = inlined_call_operand.vmem [shape: bf16[128,128], index: 5, kind: input, shape index: {}]   ;;  %s1340_s6 = inlined_call_operand.vmem [shape: f32[1,128], index: 6, kind: input, shape index: {}]   ;;  %s1341_s7 = inlined_call_operand.hbm [shape: bf16[256,128], index: 7, kind: output, shape index: {}]  }
   0x1   :  { %v841_v0 = vld [vmem:[%s1335_s1 + $0x18] sm:$0xff]  ;;  %v840_v1 = vld [vmem:[%s1335_s1 + $0x10] sm:$0xff] }
   0x2   :  { %165 = vmatpush.bf16.msra.mxu0 %v841_v0  ;;  %953 = vmatpush.bf16.msra.mxu3 %v841_v0 }
   0x3   :  { %12 = vsyncpa [#allocation3], 0  ;;  %v839_v2 = vld [vmem:[%s1335_s1 + $0x8] sm:$0xff]  ;;  %v838_v3 = vld [vmem:[%s1335_s1] sm:$0xff]  ;;  %vm112_vm0 = vcmask 523264   ;;  %s730_s11 = sshll.u32 %s1341_s7, 4  ;;  %s731_s11 = int_to_ptr.hbm [resolvable:$true] %s730_s11 }
   0x4   :  { %v28_v4 = vld [vmem:[%s1334_s0] sm:$0xff]  ;;  %v29_v5 = vld [vmem:[%s1334_s0 + $0x8] sm:$0xff]  ;;  %v30_v7 = vld [vmem:[%s1334_s0 + $0x10] sm:$0xff]  ;;  %s1006_s12 = smov 64  }
   0x5   :  { %v60_v6 = vpack.c.bf16 %v29_v5, %v28_v4  ;;  %v31_v8 = vld [vmem:[%s1334_s0 + $0x18] sm:$0xff]  ;;  %v32_v10 = vld [vmem:[%s1334_s0 + $0x20] sm:$0xff]  ;;  %v33_v11 = vld [vmem:[%s1334_s0 + $0x28] sm:$0xff] }
   0x6   :  { %166 = vmatpush.bf16.msra.mxu0 %v840_v1  ;;  %954 = vmatpush.bf16.msra.mxu3 %v840_v1  ;;  %v61_v9 = vpack.c.bf16 %v31_v8, %v30_v7  ;;  %v62_v12 = vpack.c.bf16 %v33_v11, %v32_v10  ;;  %v34_v13 = vld [vmem:[%s1334_s0 + $0x30] sm:$0xff]  ;;  %v35_v14 = vld [vmem:[%s1334_s0 + $0x38] sm:$0xff]  ;;  %v36_v16 = vld [vmem:[%s1334_s0 + $0x40] sm:$0xff] }
   0x7   :  { %v63_v15 = vpack.c.bf16 %v35_v14, %v34_v13  ;;  %v37_v17 = vld [vmem:[%s1334_s0 + $0x48] sm:$0xff]  ;;  %v849_v19 = vld [vmem:[%s1337_s3 + $0x38] sm:$0xff]  ;;  %v38_v20 = vld [vmem:[%s1334_s0 + $0x50] sm:$0xff] }
   0x8   :  { %v64_v18 = vpack.c.bf16 %v37_v17, %v36_v16  ;;  %366 = vmatpush.bf16.msra.mxu1 %v849_v19  ;;  %v39_v21 = vld [vmem:[%s1334_s0 + $0x58] sm:$0xff]  ;;  %v848_v23 = vld [vmem:[%s1337_s3 + $0x30] sm:$0xff]  ;;  %v847_v24 = vld [vmem:[%s1337_s3 + $0x28] sm:$0xff] }
   0x9   :  { %v65_v22 = vpack.c.bf16 %v39_v21, %v38_v20  ;;  %v846_v25 = vld [vmem:[%s1337_s3 + $0x20] sm:$0xff]  ;;  %v41_v27 = vld [vmem:[%s1334_s0 + $0x68] sm:$0xff]  ;;  %v845_v28 = vld [vmem:[%s1337_s3 + $0x18] sm:$0xff] }
   0xa   :  { %167 = vmatpush.bf16.msra.mxu0 %v839_v2  ;;  %955 = vmatpush.bf16.msra.mxu3 %v839_v2  ;;  %v40_v26 = vld [vmem:[%s1334_s0 + $0x60] sm:$0xff]  ;;  %v844_v30 = vld [vmem:[%s1337_s3 + $0x10] sm:$0xff]  ;;  %v843_v31 = vld [vmem:[%s1337_s3 + $0x8] sm:$0xff] }
   0xb   :  { %v66_v29 = vpack.c.bf16 %v41_v27, %v40_v26  ;;  %v842_v32 = vld [vmem:[%s1337_s3] sm:$0xff]  ;;  %v42_v33 = vld [vmem:[%s1334_s0 + $0x70] sm:$0xff]  ;;  %v43_v34 = vld [vmem:[%s1334_s0 + $0x78] sm:$0xff]  ;;  %s1007_s3 = smov 4  }
   0xc   :  { %367 = vmatpush.bf16.msra.mxu1 %v848_v23  ;;  %v67_v35 = vpack.c.bf16 %v43_v34, %v42_v33  ;;  %v44_v36 = vld [vmem:[%s1334_s0 + $0x80] sm:$0xff]  ;;  %v45_v37 = vld [vmem:[%s1334_s0 + $0x88] sm:$0xff]  ;;  %v46_v46 = vld [vmem:[%s1334_s0 + $0x90] sm:$0xff] }
   0xd   :  { %v68_v38 = vpack.c.bf16 %v45_v37, %v44_v36  ;;  %v1149_v40 = vld [vmem:[%s1336_s2] ss:$0 sm:$0xff]  ;;  %v47_v47 = vld [vmem:[%s1334_s0 + $0x98] sm:$0xff]  ;;  %v49_v57 = vld [vmem:[%s1334_s0 + $0xa8] sm:$0xff] }
   0xe   :  { %168 = vmatpush.bf16.msra.mxu0 %v838_v3  ;;  %956 = vmatpush.bf16.msra.mxu3 %v838_v3  ;;  %v69_v49 = vpack.c.bf16 %v47_v47, %v46_v46  ;;  %v48_v56 = vld [vmem:[%s1334_s0 + $0xa0] sm:$0xff]  ;;  %v54_v61 = vld [vmem:[%s1334_s0 + $0xd0] sm:$0xff]  ;;  %v55_v62 = vld [vmem:[%s1334_s0 + $0xd8] sm:$0xff] }
   0xf   :  { %v70_v59 = vpack.c.bf16 %v49_v57, %v48_v56  ;;  %v73_v63 = vpack.c.bf16 %v55_v62, %v54_v61  ;;  %v50_v5 = vld [vmem:[%s1334_s0 + $0xb0] sm:$0xff]  ;;  %v56_v10 = vld [vmem:[%s1334_s0 + $0xe0] sm:$0xff]  ;;  %v57_v11 = vld [vmem:[%s1334_s0 + $0xe8] sm:$0xff] }
  0x10   :  { %368 = vmatpush.bf16.msra.mxu1 %v847_v24  ;;  %v857_v36 = vld [vmem:[%s1339_s5 + $0x38] sm:$0xff] }
  0x11   :  { %758 = vmatmul.msk.bf16.vlgmr.msra.gmra.mxu0 %vm112_vm0, %v60_v6  ;;  %771 = vmatmul.msk.bf16.vlgmr.msra.gmra.mxu3 %vm112_vm0, %v73_v63  ;;  %v51_v6 = vld [vmem:[%s1334_s0 + $0xb8] sm:$0xff] }
  0x12   :  { %957 = vmatpush.bf16.msrb.mxu3 %v849_v19  ;;  %v71_v8 = vpack.c.bf16 %v51_v6, %v50_v5  ;;  %v53_v19 = vld [vmem:[%s1334_s0 + $0xc8] sm:$0xff]  ;;  %571 = vmatpush.bf16.msra.mxu2 %v857_v36  ;;  %v1246_v6 = vld [vmem:[%s1338_s4] ss:$0 sm:$0xff] }
  0x14   :  { %369 = vmatpush.bf16.msra.mxu1 %v846_v25 }
  0x16   :  { %958 = vmatpush.bf16.msrb.mxu3 %v848_v23  ;;  %v58_v23 = vld [vmem:[%s1334_s0 + $0xf0] sm:$0xff] }
  0x18   :  { %370 = vmatpush.bf16.msra.mxu1 %v845_v28 }
  0x1a   :  { %959 = vmatpush.bf16.msrb.mxu3 %v847_v24  ;;  %v59_v24 = vld [vmem:[%s1334_s0 + $0xf8] sm:$0xff] }
  0x1c   :  { %371 = vmatpush.bf16.msra.mxu1 %v844_v30 }
  0x1e   :  { %960 = vmatpush.bf16.msrb.mxu3 %v846_v25  ;;  %v75_v25 = vpack.c.bf16 %v59_v24, %v58_v23 }
  0x20   :  { %372 = vmatpush.bf16.msra.mxu1 %v843_v31 }
  0x21   :  { %759 = vmatmul.msk.bf16.gmra.mxu0 %vm112_vm0, %v61_v9 }
  0x22   :  { %961 = vmatpush.bf16.msrb.mxu3 %v845_v28 }
  0x24   :  { %373 = vmatpush.bf16.msra.mxu1 %v842_v32 }
  0x26   :  { %962 = vmatpush.bf16.msrb.mxu3 %v844_v30 }
  0x2a   :  { %963 = vmatpush.bf16.msrb.mxu3 %v843_v31 }
  0x2e   :  { %964 = vmatpush.bf16.msrb.mxu3 %v842_v32 }
  0x31   :  { %760 = vmatmul.msk.bf16.gmra.mxu0 %vm112_vm0, %v62_v12  ;;  %v74_v12 = vpack.c.bf16 %v57_v11, %v56_v10 }
  0x32   :  { %965 = vmatpush.bf16.msra.mxu3 %v857_v36 }
  0x33   :  { %772 = vmatmul.msk.bf16.gmra.mxu3 %vm112_vm0, %v74_v12 }
  0x41   :  { %761 = vmatmul.msk.bf16.gmra.mxu0 %vm112_vm0, %v63_v15 }
  0x43   :  { %773 = vmatmul.msk.bf16.gmra.mxu3 %vm112_vm0, %v75_v25 }
  0x51   :  { %762 = vmatmul.msk.bf16.gmra.mxu0 %vm112_vm0, %v64_v18  ;;  %v52_v18 = vld [vmem:[%s1334_s0 + $0xc0] sm:$0xff] }
  0x52   :  { %v72_v21 = vpack.c.bf16 %v53_v19, %v52_v18 }
  0x61   :  { %763 = vmatmul.msk.bf16.gmra.mxu0 %vm112_vm0, %v65_v22 }
  0x71   :  { %764 = vmatmul.msk.bf16.gmra.mxu0 %vm112_vm0, %v66_v29 }
  0x81   :  { %765 = vmatmul.msk.bf16.gmra.mxu0 %vm112_vm0, %v67_v35 }
  0x8e   :  { %v170_v39 = vpop.f32.mrf.mxu0 }
  0x8f   :  { %v171_v41 = vadd.f32 %v1149_v40, %v170_v39 }
  0x91   :  { %766 = vmatmul.msk.bf16.gmra.mxu0 %vm112_vm0, %v68_v38  ;;  %v250_v44 = vmax.f32 %v171_v41, 0.0  ;;  %v856_v41 = vld [vmem:[%s1339_s5 + $0x30] sm:$0xff] }
  0x92   :  { %572 = vmatpush.bf16.msra.mxu2 %v856_v41  ;;  %966 = vmatpush.bf16.msra.mxu3 %v856_v41 }
  0x96   :  { %v172_v42 = vpop.f32.mrf.mxu0 }
  0x97   :  { %v173_v43 = vadd.f32 %v1149_v40, %v172_v42 }
  0x99   :  { %v251_v45 = vmax.f32 %v173_v43, 0.0  ;;  %v855_v43 = vld [vmem:[%s1339_s5 + $0x28] sm:$0xff] }
  0x9a   :  { %573 = vmatpush.bf16.msra.mxu2 %v855_v43  ;;  %967 = vmatpush.bf16.msra.mxu3 %v855_v43 }
  0x9b   :  { %v282_v48 = vpack.c.bf16 %v251_v45, %v250_v44  ;;  %v854_v44 = vld [vmem:[%s1339_s5 + $0x20] sm:$0xff] }
  0x9d   :  { %374 = vmatmul.bf16.vlgmr.msra.gmra.mxu1 %v282_v48  ;;  %v853_v48 = vld [vmem:[%s1339_s5 + $0x18] sm:$0xff] }
  0x9e   :  { %v175_v50 = vpop.f32.mrf.mxu0  ;;  %574 = vmatpush.bf16.msra.mxu2 %v854_v44  ;;  %968 = vmatpush.bf16.msra.mxu3 %v854_v44 }
  0x9f   :  { %v176_v51 = vadd.f32 %v1149_v40, %v175_v50 }
  0xa1   :  { %767 = vmatmul.msk.bf16.gmra.mxu0 %vm112_vm0, %v69_v49  ;;  %v252_v54 = vmax.f32 %v176_v51, 0.0 }
  0xa2   :  { %575 = vmatpush.bf16.msra.mxu2 %v853_v48  ;;  %969 = vmatpush.bf16.msra.mxu3 %v853_v48 }
  0xa6   :  { %v177_v52 = vpop.f32.mrf.mxu0 }
  0xa7   :  { %v178_v53 = vadd.f32 %v1149_v40, %v177_v52  ;;  %v852_v52 = vld [vmem:[%s1339_s5 + $0x10] sm:$0xff] }
  0xa8   :  { %576 = vmatpush.bf16.msra.mxu2 %v852_v52  ;;  %970 = vmatpush.bf16.msra.mxu3 %v852_v52 }
  0xa9   :  { %v253_v55 = vmax.f32 %v178_v53, 0.0 }
  0xab   :  { %v283_v58 = vpack.c.bf16 %v253_v55, %v252_v54  ;;  %v851_v54 = vld [vmem:[%s1339_s5 + $0x8] sm:$0xff]  ;;  %v850_v55 = vld [vmem:[%s1339_s5] sm:$0xff] }
  0xac   :  { %577 = vmatpush.bf16.msra.mxu2 %v851_v54  ;;  %971 = vmatpush.bf16.msra.mxu3 %v851_v54 }
  0xad   :  { %379 = vmatmul.bf16.gmra.mxu1 %v283_v58 }
  0xae   :  { %v180_v60 = vpop.f32.mrf.mxu0 }
  0xaf   :  { %v181_v0 = vadd.f32 %v1149_v40, %v180_v60 }
  0xb0   :  { %578 = vmatpush.bf16.msra.mxu2 %v850_v55  ;;  %972 = vmatpush.bf16.msra.mxu3 %v850_v55 }
  0xb1   :  { %768 = vmatmul.msk.bf16.gmra.mxu0 %vm112_vm0, %v70_v59  ;;  %v254_v3 = vmax.f32 %v181_v0, 0.0 }
  0xb6   :  { %v182_v1 = vpop.f32.mrf.mxu0 }
  0xb7   :  { %v183_v2 = vadd.f32 %v1149_v40, %v182_v1 }
  0xb9   :  { %v255_v4 = vmax.f32 %v183_v2, 0.0 }
  0xbb   :  { %v284_v7 = vpack.c.bf16 %v255_v4, %v254_v3 }
  0xbd   :  { %384 = vmatmul.bf16.gmra.mxu1 %v284_v7 }
  0xbe   :  { %v185_v9 = vpop.f32.mrf.mxu0 }
  0xbf   :  { %v186_v13 = vadd.f32 %v1149_v40, %v185_v9 }
  0xc1   :  { %769 = vmatmul.msk.bf16.gmra.mxu0 %vm112_vm0, %v71_v8  ;;  %v256_v16 = vmax.f32 %v186_v13, 0.0 }
  0xc6   :  { %v187_v14 = vpop.f32.mrf.mxu0 }
  0xc7   :  { %v188_v15 = vadd.f32 %v1149_v40, %v187_v14 }
  0xc9   :  { %v257_v17 = vmax.f32 %v188_v15, 0.0 }
  0xcb   :  { %v285_v20 = vpack.c.bf16 %v257_v17, %v256_v16 }
  0xcd   :  { %389 = vmatmul.bf16.gmra.mxu1 %v285_v20 }
  0xce   :  { %v190_v22 = vpop.f32.mrf.mxu0 }
  0xcf   :  { %v191_v26 = vadd.f32 %v1149_v40, %v190_v22 }
  0xd1   :  { %770 = vmatmul.msk.bf16.gmra.mxu0 %vm112_vm0, %v72_v21  ;;  %v258_v29 = vmax.f32 %v191_v26, 0.0 }
  0xd6   :  { %v192_v27 = vpop.f32.mrf.mxu0 }
  0xd7   :  { %v193_v28 = vadd.f32 %v1149_v40, %v192_v27 }
  0xd9   :  { %v259_v30 = vmax.f32 %v193_v28, 0.0 }
  0xdb   :  { %v286_v31 = vpack.c.bf16 %v259_v30, %v258_v29 }
  0xdd   :  { %394 = vmatmul.bf16.gmra.mxu1 %v286_v31 }
  0xde   :  { %v195_v32 = vpop.f32.mrf.mxu0 }
  0xdf   :  { %v196_v33 = vadd.f32 %v1149_v40, %v195_v32 }
  0xe1   :  { %v260_v37 = vmax.f32 %v196_v33, 0.0 }
  0xe6   :  { %v197_v34 = vpop.f32.mrf.mxu0 }
  0xe7   :  { %v198_v35 = vadd.f32 %v1149_v40, %v197_v34 }
  0xe9   :  { %v261_v38 = vmax.f32 %v198_v35, 0.0 }
  0xeb   :  { %v287_v39 = vpack.c.bf16 %v261_v38, %v260_v37 }
  0xed   :  { %399 = vmatmul.bf16.gmra.mxu1 %v287_v39 }
  0xee   :  { %v200_v42 = vpop.f32.mrf.mxu0 }
  0xef   :  { %v201_v45 = vadd.f32 %v1149_v40, %v200_v42 }
  0xf1   :  { %v262_v49 = vmax.f32 %v201_v45, 0.0 }
  0xf6   :  { %v202_v46 = vpop.f32.mrf.mxu0 }
  0xf7   :  { %v203_v47 = vadd.f32 %v1149_v40, %v202_v46 }
  0xf9   :  { %v263_v50 = vmax.f32 %v203_v47, 0.0 }
  0xfb   :  { %v288_v51 = vpack.c.bf16 %v263_v50, %v262_v49 }
  0xfd   :  { %404 = vmatmul.bf16.gmra.mxu1 %v288_v51  ;;  %v235_v51 = vpop.f32.mrf.mxu3 }
  0xfe   :  { %v205_v53 = vpop.f32.mrf.mxu0 }
  0xff   :  { %v206_v56 = vadd.f32 %v1149_v40, %v205_v53 }
 0x101   :  { %v264_v59 = vmax.f32 %v206_v56, 0.0 }
 0x106   :  { %v207_v57 = vpop.f32.mrf.mxu0 }
 0x107   :  { %v208_v58 = vadd.f32 %v1149_v40, %v207_v57 }
 0x109   :  { %v265_v60 = vmax.f32 %v208_v58, 0.0 }
 0x10b   :  { %v289_v61 = vpack.c.bf16 %v265_v60, %v264_v59 }
 0x10d   :  { %409 = vmatmul.bf16.gmra.mxu1 %v289_v61  ;;  %v237_v61 = vpop.f32.mrf.mxu3 }
 0x10e   :  { %v210_v62 = vpop.f32.mrf.mxu0 }
 0x10f   :  { %v211_v63 = vadd.f32 %v1149_v40, %v210_v62 }
 0x111   :  { %v266_v2 = vmax.f32 %v211_v63, 0.0 }
 0x116   :  { %v212_v0 = vpop.f32.mrf.mxu0 }
 0x117   :  { %v213_v1 = vadd.f32 %v1149_v40, %v212_v0 }
 0x119   :  { %v267_v3 = vmax.f32 %v213_v1, 0.0 }
 0x11a   :  { %v375_v4 = vpop.f32.mrf.mxu1 }
 0x11b   :  { %v290_v5 = vpack.c.bf16 %v267_v3, %v266_v2  ;;  %v376_v8 = vadd.f32 %v1246_v6, %v375_v4  ;;  %v240_v4 = vpop.f32.mrf.mxu3 }
 0x11d   :  { %414 = vmatmul.bf16.gmra.mxu1 %v290_v5  ;;  %v455_v11 = vmax.f32 %v376_v8, 0.0  ;;  %v236_v5 = vadd.f32 %v1149_v40, %v235_v51 }
 0x11e   :  { %v215_v7 = vpop.f32.mrf.mxu0 }
 0x11f   :  { %v216_v12 = vadd.f32 %v1149_v40, %v215_v7  ;;  %v238_v7 = vadd.f32 %v1149_v40, %v237_v61 }
 0x121   :  { %v268_v17 = vmax.f32 %v216_v12, 0.0  ;;  %v277_v12 = vmax.f32 %v238_v7, 0.0 }
 0x122   :  { %v377_v9 = vpop.f32.mrf.mxu1 }
 0x123   :  { %v378_v10 = vadd.f32 %v1246_v6, %v377_v9 }
 0x125   :  { %v456_v13 = vmax.f32 %v378_v10, 0.0 }
 0x126   :  { %v217_v14 = vpop.f32.mrf.mxu0 }
 0x127   :  { %v218_v15 = vadd.f32 %v1149_v40, %v217_v14  ;;  %v487_v16 = vpack.c.bf16 %v456_v13, %v455_v11  ;;  %v276_v11 = vmax.f32 %v236_v5, 0.0 }
 0x129   :  { %v269_v18 = vmax.f32 %v218_v15, 0.0  ;;  %579 = vmatmul.bf16.vlgmr.msra.gmra.mxu2 %v487_v16  ;;  %v295_v15 = vpack.c.bf16 %v277_v12, %v276_v11  ;;  %v242_v16 = vpop.f32.mrf.mxu3 }
 0x12a   :  { %v380_v19 = vpop.f32.mrf.mxu1 }
 0x12b   :  { %v291_v20 = vpack.c.bf16 %v269_v18, %v268_v17  ;;  %v381_v22 = vadd.f32 %v1246_v6, %v380_v19  ;;  %v241_v19 = vadd.f32 %v1149_v40, %v240_v4 }
 0x12d   :  { %419 = vmatmul.bf16.gmra.mxu1 %v291_v20  ;;  %v457_v25 = vmax.f32 %v381_v22, 0.0  ;;  %v243_v20 = vadd.f32 %v1149_v40, %v242_v16 }
 0x12e   :  { %v220_v21 = vpop.f32.mrf.mxu0 }
 0x12f   :  { %v221_v26 = vadd.f32 %v1149_v40, %v220_v21 }
 0x131   :  { %v270_v31 = vmax.f32 %v221_v26, 0.0  ;;  %v279_v26 = vmax.f32 %v243_v20, 0.0 }
 0x132   :  { %v382_v23 = vpop.f32.mrf.mxu1 }
 0x133   :  { %v383_v24 = vadd.f32 %v1246_v6, %v382_v23 }
 0x135   :  { %v458_v27 = vmax.f32 %v383_v24, 0.0  ;;  %v245_v24 = vpop.f32.mrf.mxu3 }
 0x136   :  { %v222_v28 = vpop.f32.mrf.mxu0 }
 0x137   :  { %v223_v29 = vadd.f32 %v1149_v40, %v222_v28  ;;  %v488_v30 = vpack.c.bf16 %v458_v27, %v457_v25  ;;  %v278_v25 = vmax.f32 %v241_v19, 0.0 }
 0x139   :  { %v271_v32 = vmax.f32 %v223_v29, 0.0  ;;  %584 = vmatmul.bf16.gmra.mxu2 %v488_v30  ;;  %v296_v29 = vpack.c.bf16 %v279_v26, %v278_v25 }
 0x13a   :  { %v385_v33 = vpop.f32.mrf.mxu1 }
 0x13b   :  { %v292_v34 = vpack.c.bf16 %v271_v32, %v270_v31  ;;  %v386_v36 = vadd.f32 %v1246_v6, %v385_v33  ;;  %v246_v33 = vadd.f32 %v1149_v40, %v245_v24 }
 0x13d   :  { %424 = vmatmul.bf16.gmra.mxu1 %v292_v34  ;;  %v459_v39 = vmax.f32 %v386_v36, 0.0  ;;  %v247_v30 = vpop.f32.mrf.mxu3 }
 0x13e   :  { %v225_v35 = vpop.f32.mrf.mxu0  ;;  %v248_v34 = vadd.f32 %v1149_v40, %v247_v30 }
 0x13f   :  { %v226_v41 = vadd.f32 %v1149_v40, %v225_v35 }
 0x141   :  { %v272_v46 = vmax.f32 %v226_v41, 0.0 }
 0x142   :  { %v387_v37 = vpop.f32.mrf.mxu1 }
 0x143   :  { %v388_v38 = vadd.f32 %v1246_v6, %v387_v37 }
 0x145   :  { %v460_v42 = vmax.f32 %v388_v38, 0.0  ;;  %v280_v38 = vmax.f32 %v246_v33, 0.0 }
 0x146   :  { %v227_v43 = vpop.f32.mrf.mxu0 }
 0x147   :  { %v228_v44 = vadd.f32 %v1149_v40, %v227_v43  ;;  %v489_v45 = vpack.c.bf16 %v460_v42, %v459_v39  ;;  %v281_v39 = vmax.f32 %v248_v34, 0.0 }
 0x149   :  { %v273_v47 = vmax.f32 %v228_v44, 0.0  ;;  %589 = vmatmul.bf16.gmra.mxu2 %v489_v45  ;;  %v297_v43 = vpack.c.bf16 %v281_v39, %v280_v38 }
 0x14a   :  { %v390_v48 = vpop.f32.mrf.mxu1 }
 0x14b   :  { %v293_v49 = vpack.c.bf16 %v273_v47, %v272_v46  ;;  %v391_v52 = vadd.f32 %v1246_v6, %v390_v48 }
 0x14d   :  { %429 = vmatmul.bf16.gmra.mxu1 %v293_v49  ;;  %v461_v55 = vmax.f32 %v391_v52, 0.0 }
 0x14e   :  { %v230_v50 = vpop.f32.mrf.mxu0 }
 0x14f   :  { %v231_v56 = vadd.f32 %v1149_v40, %v230_v50 }
 0x151   :  { %v274_v62 = vmax.f32 %v231_v56, 0.0 }
 0x152   :  { %v392_v53 = vpop.f32.mrf.mxu1 }
 0x153   :  { %v393_v54 = vadd.f32 %v1246_v6, %v392_v53 }
 0x155   :  { %v462_v57 = vmax.f32 %v393_v54, 0.0 }
 0x156   :  { %v232_v58 = vpop.f32.mrf.mxu0 }
 0x157   :  { %v233_v59 = vadd.f32 %v1149_v40, %v232_v58  ;;  %v490_v60 = vpack.c.bf16 %v462_v57, %v461_v55 }
 0x159   :  { %v275_v63 = vmax.f32 %v233_v59, 0.0  ;;  %594 = vmatmul.bf16.gmra.mxu2 %v490_v60  ;;  %v1284_v59 = vld [vmem:[%s1340_s6] ss:$0 sm:$0xff]  ;;  %s1005_s6 = smov [#allocation2]  }
 0x15a   :  { %v395_v0 = vpop.f32.mrf.mxu1  ;;  %s728_s8 = sshll.u32 %s1005_s6, 4  ;;  %s729_s8 = int_to_ptr.vmem [resolvable:$true] %s728_s8 }
 0x15b   :  { %v294_v1 = vpack.c.bf16 %v275_v63, %v274_v62  ;;  %v396_v2 = vadd.f32 %v1246_v6, %v395_v0 }
 0x15d   :  { %434 = vmatmul.bf16.vlgmr.msrb.gmra.mxu3 %v294_v1  ;;  %v463_v9 = vmax.f32 %v396_v2, 0.0 }
 0x162   :  { %v397_v3 = vpop.f32.mrf.mxu1 }
 0x163   :  { %v398_v8 = vadd.f32 %v1246_v6, %v397_v3 }
 0x165   :  { %v464_v10 = vmax.f32 %v398_v8, 0.0 }
 0x167   :  { %v491_v13 = vpack.c.bf16 %v464_v10, %v463_v9 }
 0x169   :  { %599 = vmatmul.bf16.gmra.mxu2 %v491_v13 }
 0x16a   :  { %v400_v14 = vpop.f32.mrf.mxu1 }
 0x16b   :  { %v401_v17 = vadd.f32 %v1246_v6, %v400_v14 }
 0x16d   :  { %439 = vmatmul.bf16.gmra.mxu3 %v295_v15  ;;  %v465_v22 = vmax.f32 %v401_v17, 0.0 }
 0x172   :  { %v402_v18 = vpop.f32.mrf.mxu1 }
 0x173   :  { %v403_v21 = vadd.f32 %v1246_v6, %v402_v18 }
 0x175   :  { %v466_v23 = vmax.f32 %v403_v21, 0.0 }
 0x177   :  { %v492_v27 = vpack.c.bf16 %v466_v23, %v465_v22 }
 0x179   :  { %604 = vmatmul.bf16.gmra.mxu2 %v492_v27 }
 0x17a   :  { %v405_v28 = vpop.f32.mrf.mxu1 }
 0x17b   :  { %v406_v31 = vadd.f32 %v1246_v6, %v405_v28 }
 0x17d   :  { %444 = vmatmul.bf16.gmra.mxu3 %v296_v29  ;;  %v467_v36 = vmax.f32 %v406_v31, 0.0 }
 0x182   :  { %v407_v32 = vpop.f32.mrf.mxu1 }
 0x183   :  { %v408_v35 = vadd.f32 %v1246_v6, %v407_v32 }
 0x185   :  { %v468_v37 = vmax.f32 %v408_v35, 0.0 }
 0x187   :  { %v493_v41 = vpack.c.bf16 %v468_v37, %v467_v36 }
 0x189   :  { %609 = vmatmul.bf16.gmra.mxu2 %v493_v41 }
 0x18a   :  { %v410_v42 = vpop.f32.mrf.mxu1 }
 0x18b   :  { %v411_v44 = vadd.f32 %v1246_v6, %v410_v42 }
 0x18d   :  { %449 = vmatmul.bf16.gmra.mxu3 %v297_v43  ;;  %v469_v47 = vmax.f32 %v411_v44, 0.0 }
 0x192   :  { %v412_v45 = vpop.f32.mrf.mxu1 }
 0x193   :  { %v413_v46 = vadd.f32 %v1246_v6, %v412_v45 }
 0x195   :  { %v470_v48 = vmax.f32 %v413_v46, 0.0 }
 0x197   :  { %v494_v49 = vpack.c.bf16 %v470_v48, %v469_v47 }
 0x199   :  { %614 = vmatmul.bf16.gmra.mxu2 %v494_v49 }
 0x19a   :  { %v415_v40 = vpop.f32.mrf.mxu1 }
 0x19b   :  { %v416_v50 = vadd.f32 %v1246_v6, %v415_v40 }
 0x19d   :  { %v471_v53 = vmax.f32 %v416_v50, 0.0 }
 0x1a2   :  { %v417_v51 = vpop.f32.mrf.mxu1 }
 0x1a3   :  { %v418_v52 = vadd.f32 %v1246_v6, %v417_v51 }
 0x1a5   :  { %v472_v54 = vmax.f32 %v418_v52, 0.0 }
 0x1a7   :  { %v495_v55 = vpack.c.bf16 %v472_v54, %v471_v53 }
 0x1a9   :  { %619 = vmatmul.bf16.gmra.mxu2 %v495_v55 }
 0x1aa   :  { %v420_v56 = vpop.f32.mrf.mxu1 }
 0x1ab   :  { %v421_v58 = vadd.f32 %v1246_v6, %v420_v56 }
 0x1ac   :  { %v580_v57 = vpop.f32.mrf.mxu2 }
 0x1ad   :  { %v473_v63 = vmax.f32 %v421_v58, 0.0  ;;  %v581_v0 = vadd.f32 %v1284_v59, %v580_v57 }
 0x1b2   :  { %v422_v60 = vpop.f32.mrf.mxu1 }
 0x1b3   :  { %v423_v61 = vadd.f32 %v1246_v6, %v422_v60 }
 0x1b4   :  { %v582_v62 = vpop.f32.mrf.mxu2 }
 0x1b5   :  { %v474_v1 = vmax.f32 %v423_v61, 0.0  ;;  %v583_v2 = vadd.f32 %v1284_v59, %v582_v62 }
 0x1b7   :  { %v861_v3 = vpack.c.bf16 %v583_v2, %v581_v0  ;;  %v496_v4 = vpack.c.bf16 %v474_v1, %v473_v63 }
 0x1b9   :  { %862 = vst [vmem:[#allocation2] sm:$0xff] %v861_v3   ;;  %624 = vmatmul.bf16.gmra.mxu2 %v496_v4 }
 0x1ba   :  { %v425_v5 = vpop.f32.mrf.mxu1 }
 0x1bb   :  { %v426_v8 = vadd.f32 %v1246_v6, %v425_v5 }
 0x1bc   :  { %v585_v7 = vpop.f32.mrf.mxu2 }
 0x1bd   :  { %v475_v12 = vmax.f32 %v426_v8, 0.0  ;;  %v586_v13 = vadd.f32 %v1284_v59, %v585_v7 }
 0x1c2   :  { %v427_v9 = vpop.f32.mrf.mxu1 }
 0x1c3   :  { %v428_v10 = vadd.f32 %v1246_v6, %v427_v9 }
 0x1c4   :  { %v587_v11 = vpop.f32.mrf.mxu2 }
 0x1c5   :  { %v476_v14 = vmax.f32 %v428_v10, 0.0  ;;  %v588_v15 = vadd.f32 %v1284_v59, %v587_v11 }
 0x1c7   :  { %v866_v16 = vpack.c.bf16 %v588_v15, %v586_v13  ;;  %v497_v17 = vpack.c.bf16 %v476_v14, %v475_v12 }
 0x1c9   :  { %938 = vst [vmem:[#allocation2 + $0x8] sm:$0xff] %v866_v16   ;;  %629 = vmatmul.bf16.gmra.mxu2 %v497_v17 }
 0x1ca   :  { %v430_v18 = vpop.f32.mrf.mxu1 }
 0x1cb   :  { %v431_v20 = vadd.f32 %v1246_v6, %v430_v18 }
 0x1cc   :  { %v590_v19 = vpop.f32.mrf.mxu2 }
 0x1cd   :  { %v477_v24 = vmax.f32 %v431_v20, 0.0  ;;  %v591_v25 = vadd.f32 %v1284_v59, %v590_v19 }
 0x1d2   :  { %v432_v21 = vpop.f32.mrf.mxu1 }
 0x1d3   :  { %v433_v22 = vadd.f32 %v1246_v6, %v432_v21 }
 0x1d4   :  { %v592_v23 = vpop.f32.mrf.mxu2 }
 0x1d5   :  { %v478_v26 = vmax.f32 %v433_v22, 0.0  ;;  %v593_v27 = vadd.f32 %v1284_v59, %v592_v23 }
 0x1d7   :  { %v871_v28 = vpack.c.bf16 %v593_v27, %v591_v25  ;;  %v498_v29 = vpack.c.bf16 %v478_v26, %v477_v24 }
 0x1d9   :  { %939 = vst [vmem:[#allocation2 + $0x10] sm:$0xff] %v871_v28   ;;  %634 = vmatmul.bf16.gmra.mxu2 %v498_v29 }
 0x1dc   :  { %v595_v30 = vpop.f32.mrf.mxu2 }
 0x1dd   :  { %v596_v33 = vadd.f32 %v1284_v59, %v595_v30 }
 0x1e0   :  { %v435_v31 = vpop.f32.mrf.mxu3 }
 0x1e1   :  { %v436_v35 = vadd.f32 %v1246_v6, %v435_v31 }
 0x1e3   :  { %v479_v39 = vmax.f32 %v436_v35, 0.0 }
 0x1e4   :  { %v597_v32 = vpop.f32.mrf.mxu2 }
 0x1e5   :  { %v598_v34 = vadd.f32 %v1284_v59, %v597_v32 }
 0x1e7   :  { %v876_v36 = vpack.c.bf16 %v598_v34, %v596_v33 }
 0x1e8   :  { %v437_v37 = vpop.f32.mrf.mxu3 }
 0x1e9   :  { %940 = vst [vmem:[#allocation2 + $0x18] sm:$0xff] %v876_v36   ;;  %v438_v38 = vadd.f32 %v1246_v6, %v437_v37 }
 0x1eb   :  { %v480_v41 = vmax.f32 %v438_v38, 0.0 }
 0x1ec   :  { %v600_v42 = vpop.f32.mrf.mxu2 }
 0x1ed   :  { %v499_v43 = vpack.c.bf16 %v480_v41, %v479_v39  ;;  %v601_v46 = vadd.f32 %v1284_v59, %v600_v42 }
 0x1ef   :  { %639 = vmatmul.bf16.vlgmr.msra.gmra.mxu3 %v499_v43 }
 0x1f0   :  { %v440_v44 = vpop.f32.mrf.mxu3 }
 0x1f1   :  { %v441_v48 = vadd.f32 %v1246_v6, %v440_v44 }
 0x1f3   :  { %v481_v51 = vmax.f32 %v441_v48, 0.0 }
 0x1f4   :  { %v602_v45 = vpop.f32.mrf.mxu2 }
 0x1f5   :  { %v603_v47 = vadd.f32 %v1284_v59, %v602_v45 }
 0x1f7   :  { %v881_v49 = vpack.c.bf16 %v603_v47, %v601_v46 }
 0x1f8   :  { %v442_v40 = vpop.f32.mrf.mxu3 }
 0x1f9   :  { %941 = vst [vmem:[#allocation2 + $0x20] sm:$0xff] %v881_v49   ;;  %v443_v50 = vadd.f32 %v1246_v6, %v442_v40 }
 0x1fb   :  { %v482_v52 = vmax.f32 %v443_v50, 0.0 }
 0x1fc   :  { %v605_v53 = vpop.f32.mrf.mxu2 }
 0x1fd   :  { %v500_v54 = vpack.c.bf16 %v482_v52, %v481_v51  ;;  %v606_v57 = vadd.f32 %v1284_v59, %v605_v53 }
 0x1ff   :  { %644 = vmatmul.bf16.gmra.mxu3 %v500_v54 }
 0x200   :  { %v445_v55 = vpop.f32.mrf.mxu3 }
 0x201   :  { %v446_v60 = vadd.f32 %v1246_v6, %v445_v55 }
 0x203   :  { %v483_v0 = vmax.f32 %v446_v60, 0.0 }
 0x204   :  { %v607_v56 = vpop.f32.mrf.mxu2 }
 0x205   :  { %v608_v58 = vadd.f32 %v1284_v59, %v607_v56 }
 0x207   :  { %v886_v61 = vpack.c.bf16 %v608_v58, %v606_v57 }
 0x208   :  { %v447_v62 = vpop.f32.mrf.mxu3 }
 0x209   :  { %942 = vst [vmem:[#allocation2 + $0x28] sm:$0xff] %v886_v61   ;;  %v448_v63 = vadd.f32 %v1246_v6, %v447_v62 }
 0x20b   :  { %v484_v1 = vmax.f32 %v448_v63, 0.0 }
 0x20c   :  { %v610_v2 = vpop.f32.mrf.mxu2 }
 0x20d   :  { %v501_v3 = vpack.c.bf16 %v484_v1, %v483_v0  ;;  %v611_v7 = vadd.f32 %v1284_v59, %v610_v2 }
 0x20f   :  { %649 = vmatmul.bf16.gmra.mxu3 %v501_v3 }
 0x210   :  { %v450_v4 = vpop.f32.mrf.mxu3 }
 0x211   :  { %v451_v9 = vadd.f32 %v1246_v6, %v450_v4 }
 0x213   :  { %v485_v13 = vmax.f32 %v451_v9, 0.0 }
 0x214   :  { %v612_v5 = vpop.f32.mrf.mxu2 }
 0x215   :  { %v613_v8 = vadd.f32 %v1284_v59, %v612_v5 }
 0x217   :  { %v891_v10 = vpack.c.bf16 %v613_v8, %v611_v7 }
 0x218   :  { %v452_v11 = vpop.f32.mrf.mxu3 }
 0x219   :  { %943 = vst [vmem:[#allocation2 + $0x30] sm:$0xff] %v891_v10   ;;  %v453_v12 = vadd.f32 %v1246_v6, %v452_v11 }
 0x21b   :  { %v486_v14 = vmax.f32 %v453_v12, 0.0 }
 0x21c   :  { %v615_v15 = vpop.f32.mrf.mxu2 }
 0x21d   :  { %v502_v16 = vpack.c.bf16 %v486_v14, %v485_v13  ;;  %v616_v18 = vadd.f32 %v1284_v59, %v615_v15 }
 0x21f   :  { %654 = vmatmul.bf16.gmra.mxu3 %v502_v16 }
 0x224   :  { %v617_v17 = vpop.f32.mrf.mxu2 }
 0x225   :  { %v618_v19 = vadd.f32 %v1284_v59, %v617_v17 }
 0x227   :  { %v896_v20 = vpack.c.bf16 %v618_v19, %v616_v18 }
 0x229   :  { %944 = vst [vmem:[#allocation2 + $0x38] sm:$0xff] %v896_v20  }
 0x22c   :  { %v620_v21 = vpop.f32.mrf.mxu2 }
 0x22d   :  { %v621_v23 = vadd.f32 %v1284_v59, %v620_v21 }
 0x234   :  { %v622_v22 = vpop.f32.mrf.mxu2 }
 0x235   :  { %v623_v24 = vadd.f32 %v1284_v59, %v622_v22 }
 0x237   :  { %v901_v25 = vpack.c.bf16 %v623_v24, %v621_v23 }
 0x239   :  { %945 = vst [vmem:[#allocation2 + $0x40] sm:$0xff] %v901_v25  }
 0x23c   :  { %v625_v6 = vpop.f32.mrf.mxu2 }
 0x23d   :  { %v626_v27 = vadd.f32 %v1284_v59, %v625_v6 }
 0x244   :  { %v627_v26 = vpop.f32.mrf.mxu2 }
 0x245   :  { %v628_v28 = vadd.f32 %v1284_v59, %v627_v26 }
 0x247   :  { %v906_v29 = vpack.c.bf16 %v628_v28, %v626_v27 }
 0x249   :  { %946 = vst [vmem:[#allocation2 + $0x48] sm:$0xff] %v906_v29  }
 0x24c   :  { %v630_v30 = vpop.f32.mrf.mxu2 }
 0x24d   :  { %v631_v32 = vadd.f32 %v1284_v59, %v630_v30 }
 0x254   :  { %v632_v31 = vpop.f32.mrf.mxu2 }
 0x255   :  { %v633_v33 = vadd.f32 %v1284_v59, %v632_v31 }
 0x257   :  { %v911_v34 = vpack.c.bf16 %v633_v33, %v631_v32 }
 0x259   :  { %947 = vst [vmem:[#allocation2 + $0x50] sm:$0xff] %v911_v34  }
 0x25c   :  { %v635_v35 = vpop.f32.mrf.mxu2 }
 0x25d   :  { %v636_v37 = vadd.f32 %v1284_v59, %v635_v35 }
 0x264   :  { %v637_v36 = vpop.f32.mrf.mxu2 }
 0x265   :  { %v638_v38 = vadd.f32 %v1284_v59, %v637_v36 }
 0x267   :  { %v916_v39 = vpack.c.bf16 %v638_v38, %v636_v37 }
 0x269   :  { %948 = vst [vmem:[#allocation2 + $0x58] sm:$0xff] %v916_v39  }
 0x272   :  { %v640_v41 = vpop.f32.mrf.mxu3 }
 0x273   :  { %v641_v43 = vadd.f32 %v1284_v59, %v640_v41 }
 0x27a   :  { %v642_v42 = vpop.f32.mrf.mxu3 }
 0x27b   :  { %v643_v44 = vadd.f32 %v1284_v59, %v642_v42 }
 0x27d   :  { %v921_v45 = vpack.c.bf16 %v643_v44, %v641_v43 }
 0x27f   :  { %949 = vst [vmem:[#allocation2 + $0x60] sm:$0xff] %v921_v45  }
 0x282   :  { %v645_v46 = vpop.f32.mrf.mxu3 }
 0x283   :  { %v646_v48 = vadd.f32 %v1284_v59, %v645_v46 }
 0x28a   :  { %v647_v47 = vpop.f32.mrf.mxu3 }
 0x28b   :  { %v648_v49 = vadd.f32 %v1284_v59, %v647_v47 }
 0x28d   :  { %v926_v40 = vpack.c.bf16 %v648_v49, %v646_v48 }
 0x28f   :  { %950 = vst [vmem:[#allocation2 + $0x68] sm:$0xff] %v926_v40  }
 0x292   :  { %v650_v50 = vpop.f32.mrf.mxu3 }
 0x293   :  { %v651_v52 = vadd.f32 %v1284_v59, %v650_v50 }
 0x29a   :  { %v652_v51 = vpop.f32.mrf.mxu3 }
 0x29b   :  { %v653_v53 = vadd.f32 %v1284_v59, %v652_v51 }
 0x29d   :  { %v931_v54 = vpack.c.bf16 %v653_v53, %v651_v52 }
 0x29f   :  { %951 = vst [vmem:[#allocation2 + $0x70] sm:$0xff] %v931_v54  }
 0x2a2   :  { %v655_v55 = vpop.f32.mrf.mxu3 }
 0x2a3   :  { %v656_v57 = vadd.f32 %v1284_v59, %v655_v55 }
 0x2aa   :  { %v657_v56 = vpop.f32.mrf.mxu3 }
 0x2ab   :  { %v658_v58 = vadd.f32 %v1284_v59, %v657_v56 }
 0x2ad   :  { %v936_v60 = vpack.c.bf16 %v658_v58, %v656_v57 }
 0x2af   :  { %952 = vst [vmem:[#allocation2 + $0x78] sm:$0xff] %v936_v60  }
 0x2b0   :  { %736 = dma.vmem_to_hbm [thread:$0]  %s729_s8, 2048, %s731_s11, [#allocation3], %s1006_s12, %s1006_s12, %s1007_s3  }
 0x2b1   :  { %1003 = dma.done.wait [#allocation3], 2048  }
 0x2b2   :  { %1004 = vsyncadd [#allocation3], 4294965248 }
 0x2b3   :  { %741 = vsyncpa [#allocation3], 1 }

</bundles_post_ra>
